<compile_context>
chip_gen: v5e
topology: v5e:2x2
jax: 0.10.0
libtpu: 0.0.40
codegen_flags: <defaults>
</compile_context>

<pallas_src>
import functools

import jax
import jax.numpy as jnp
from jax.experimental import pallas as pl
from jax.experimental.pallas import tpu as pltpu


def _lstm_kernel(x_ref, c0_ref, h0_ref, wx_ref, wh_ref, b_ref,
                 c_full_ref, h_full_ref, *, seq_len, batch, in_dim, hidden):
    L, B, E, H = seq_len, batch, in_dim, hidden

    # ---- Hoisted input projection for the whole sequence (one MXU pass) ----
    # (L*B, E) @ (E, 4H) + b  ->  (L*B, 4H) f32, kept as a value (tiny).
    x_all = x_ref[...].reshape(L * B, E)                       # bf16 operand
    xz = jnp.dot(x_all, wx_ref[...],
                 preferred_element_type=jnp.float32) + b_ref[...]

    # Recurrent weight, loaded once (bf16 MXU operand), hoisted out of the loop.
    wh = wh_ref[...]

    c_t = c0_ref[...]
    h_t = h0_ref[...]

    # Trace-time unrolled recurrence: all slice/store indices are static.
    for t in range(L):
        # Serial critical path: one small (B, H) @ (H, 4H) matmul + VPU/EUP.
        z = xz[t * B:(t + 1) * B, :] + jnp.dot(
            h_t.astype(wh.dtype), wh, preferred_element_type=jnp.float32)

        # Nonlinearities on the full lane-dense (B, 4H) tensor, then slice
        # gates out in [f | i | g | o] order.
        sig_z = jax.nn.sigmoid(z)
        tanh_z = jnp.tanh(z)
        f_t = sig_z[:, 0 * H:1 * H]
        i_t = sig_z[:, 1 * H:2 * H]
        g_t = tanh_z[:, 2 * H:3 * H]
        o_t = sig_z[:, 3 * H:4 * H]

        c_t = c_t * f_t + i_t * g_t
        h_t = o_t * jnp.tanh(c_t)

        c_full_ref[t] = c_t.astype(c_full_ref.dtype)
        h_full_ref[t] = h_t.astype(h_full_ref.dtype)


def lstm_forward(x, c, h, wx, wh, b, *, matmul_dtype=jnp.bfloat16):
    """x: (L, B, E), c/h: (B, H), wx: (E, 4H), wh: (H, 4H), b: (4H,)."""
    L, B, E = x.shape
    H = h.shape[-1]
    b2d = b.reshape(1, 4 * H).astype(jnp.float32)

    # bf16 MXU operands (f32 accumulation in-kernel); state/activations stay f32.
    x_mm = x.astype(matmul_dtype)
    wx_mm = wx.astype(matmul_dtype)
    wh_mm = wh.astype(matmul_dtype)

    kernel = functools.partial(_lstm_kernel, seq_len=L, batch=B,
                               in_dim=E, hidden=H)

    out_shapes = (
        jax.ShapeDtypeStruct((L, B, H), jnp.float32),  # c_full
        jax.ShapeDtypeStruct((L, B, H), jnp.float32),  # h_full
    )

    grid_spec = pltpu.PrefetchScalarGridSpec(
        num_scalar_prefetch=0,
        grid=(1,),  # single invocation; the time loop runs inside the kernel
        in_specs=[
            pl.BlockSpec((L, B, E), lambda i: (0, 0, 0)),      # x (whole seq)
            pl.BlockSpec((B, H), lambda i: (0, 0)),            # c0
            pl.BlockSpec((B, H), lambda i: (0, 0)),            # h0
            pl.BlockSpec((E, 4 * H), lambda i: (0, 0)),        # Wx
            pl.BlockSpec((H, 4 * H), lambda i: (0, 0)),        # Wh
            pl.BlockSpec((1, 4 * H), lambda i: (0, 0)),        # bias
        ],
        out_specs=[
            pl.BlockSpec((L, B, H), lambda i: (0, 0, 0)),      # c_full
            pl.BlockSpec((L, B, H), lambda i: (0, 0, 0)),      # h_full
        ],
    )

    return pl.pallas_call(
        kernel,
        out_shape=out_shapes,
        grid_spec=grid_spec,
        compiler_params=pltpu.CompilerParams(
            dimension_semantics=("arbitrary",)),
    )(x_mm, c, h, wx_mm, wh_mm, b2d)


def lstm_reference(x, c, h, wx, wh, b, *, matmul_dtype=jnp.float32):
    """Pure-JAX reference matching the PyTorch forward semantics.

    matmul_dtype=jnp.bfloat16 reproduces the kernel's MXU operand precision
    (f32 accumulation, f32 state) for a tight numerical comparison.
    """
    H = h.shape[-1]
    x = x.astype(matmul_dtype)
    wx = wx.astype(matmul_dtype)
    wh = wh.astype(matmul_dtype)

    def step(carry, x_t):
        c_prev, h_prev = carry
        z = (jnp.dot(x_t, wx, preferred_element_type=jnp.float32)
             + jnp.dot(h_prev.astype(matmul_dtype), wh,
                       preferred_element_type=jnp.float32)
             + b)
        f_t = jax.nn.sigmoid(z[:, 0 * H:1 * H])
        i_t = jax.nn.sigmoid(z[:, 1 * H:2 * H])
        g_t = jnp.tanh(z[:, 2 * H:3 * H])
        o_t = jax.nn.sigmoid(z[:, 3 * H:4 * H])
        c_t = c_prev * f_t + i_t * g_t
        h_t = o_t * jnp.tanh(c_t)
        return (c_t, h_t), (c_t, h_t)

    (_, _), (c_full, h_full) = jax.lax.scan(step, (c, h), x)
    return c_full, h_full


if __name__ == "__main__":
    # Sizes: seq=8, batch=2, embedding(input_size)=16, hidden=32.
    L, B, E, H = 8, 2, 16, 32
    VOCAB = 24  # only used by decode(); not part of forward()

    key = jax.random.PRNGKey(0)
    kx, kc, kh, kwx, kwh, kb, kd = jax.random.split(key, 7)

    x = jax.random.normal(kx, (L, B, E), dtype=jnp.float32)
    c0 = jax.random.normal(kc, (B, H), dtype=jnp.float32)
    h0 = jax.random.normal(kh, (B, H), dtype=jnp.float32)

    # Gate weights: PyTorch has 4 Linear(E+H -> H); packed as Wx:(E,4H),
    # Wh:(H,4H), b:(4H,) in [f, i, g, o] order (matches this module's math).
    bound = 1.0 / jnp.sqrt(E + H)
    wx = jax.random.uniform(kwx, (E, 4 * H), minval=-bound, maxval=bound,
                            dtype=jnp.float32)
    wh = jax.random.uniform(kwh, (H, 4 * H), minval=-bound, maxval=bound,
                            dtype=jnp.float32)
    b = jax.random.uniform(kb, (4 * H,), minval=-bound, maxval=bound,
                           dtype=jnp.float32)

    # Decoder (self.decoder) parameters — decode() is a plain Linear (glue).
    w_dec = jax.random.uniform(kd, (H, VOCAB), minval=-1.0 / jnp.sqrt(H),
                               maxval=1.0 / jnp.sqrt(H), dtype=jnp.float32)

    c_full, h_full = lstm_forward(x, c0, h0, wx, wh, b)
    c_full, h_full = jax.block_until_ready((c_full, h_full))
    assert c_full.shape == (L, B, H) and h_full.shape == (L, B, H)

    # Tight check against a matched-precision reference (same bf16 MXU
    # operands / f32 accumulation as the kernel).
    c_mref, h_mref = lstm_reference(x, c0, h0, wx, wh, b,
                                    matmul_dtype=jnp.bfloat16)
    assert jnp.allclose(c_full, c_mref, atol=1e-4, rtol=1e-4)
    assert jnp.allclose(h_full, h_mref, atol=1e-4, rtol=1e-4)

    # Loose check against the pure-f32 reference: only bf16 operand-rounding
    # noise in the matmuls separates the two.
    c_ref, h_ref = lstm_reference(x, c0, h0, wx, wh, b)
    assert jnp.allclose(c_full, c_ref, atol=5e-2, rtol=5e-2)
    assert jnp.allclose(h_full, h_ref, atol=5e-2, rtol=5e-2)

    # decode() equivalent (glue, plain JAX): logits over vocab from h.
    # TODO(synk): training glue (CrossEntropyLoss / DataLoader / SummaryWriter)
    # is outside the forward pass and intentionally not translated.
    logits = h_full @ w_dec
    jax.block_until_ready(logits)

    print("KERNEL_OK")
</pallas_src>

<mosaic_0001>
module attributes {stable_mosaic.version = 11 : i64} {
  func.func @_lstm_kernel(%arg0: i32, %arg1: memref<8x2x16xbf16, #tpu.memory_space<vmem>>, %arg2: memref<2x32xf32, #tpu.memory_space<vmem>>, %arg3: memref<2x32xf32, #tpu.memory_space<vmem>>, %arg4: memref<16x128xbf16, #tpu.memory_space<vmem>>, %arg5: memref<32x128xbf16, #tpu.memory_space<vmem>>, %arg6: memref<1x128xf32, #tpu.memory_space<vmem>>, %arg7: memref<8x2x32xf32, #tpu.memory_space<vmem>>, %arg8: memref<8x2x32xf32, #tpu.memory_space<vmem>>) attributes {dimension_semantics = [#tpu.dimension_semantics<arbitrary>], iteration_bounds = array<i64: 1>, scalar_prefetch = 0 : i64, scratch_operands = 0 : i64, tpu.core_type = #tpu.core_type<tc>, window_params = [{pipeline_mode = #tpu.pipeline_mode<synchronous>, transform_indices = @transform_0, window_bounds = array<i64: 8, 2, 16>}, {pipeline_mode = #tpu.pipeline_mode<synchronous>, transform_indices = @transform_1, window_bounds = array<i64: 2, 32>}, {pipeline_mode = #tpu.pipeline_mode<synchronous>, transform_indices = @transform_2, window_bounds = array<i64: 2, 32>}, {pipeline_mode = #tpu.pipeline_mode<synchronous>, transform_indices = @transform_3, window_bounds = array<i64: 16, 128>}, {pipeline_mode = #tpu.pipeline_mode<synchronous>, transform_indices = @transform_4, window_bounds = array<i64: 32, 128>}, {pipeline_mode = #tpu.pipeline_mode<synchronous>, transform_indices = @transform_5, window_bounds = array<i64: 1, 128>}, {pipeline_mode = #tpu.pipeline_mode<synchronous>, transform_indices = @transform_6, window_bounds = array<i64: 8, 2, 32>}, {pipeline_mode = #tpu.pipeline_mode<synchronous>, transform_indices = @transform_7, window_bounds = array<i64: 8, 2, 32>}]} {
    %c0 = arith.constant 0 : index
    %c0_0 = arith.constant 0 : index
    %c0_1 = arith.constant 0 : index
    %0 = vector.load %arg1[%c0, %c0_0, %c0_1] : memref<8x2x16xbf16, #tpu.memory_space<vmem>>, vector<8x2x16xbf16>
    %1 = vector.shape_cast %0 : vector<8x2x16xbf16> to vector<16x16xbf16>
    %c0_2 = arith.constant 0 : index
    %c0_3 = arith.constant 0 : index
    %2 = vector.load %arg4[%c0_2, %c0_3] : memref<16x128xbf16, #tpu.memory_space<vmem>>, vector<16x128xbf16>
    %cst = arith.constant dense<0.000000e+00> : vector<16x128xf32>
    %3 = tpu.matmul %1, %2, %cst {dimension_numbers = #tpu.dot_dimension_numbers<[1], [0], [0], [1], [0, 0, 1, 1], [], []>} : vector<16x16xbf16>, vector<16x128xbf16>, vector<16x128xf32> -> vector<16x128xf32>
    %c0_4 = arith.constant 0 : index
    %c0_5 = arith.constant 0 : index
    %4 = vector.load %arg6[%c0_4, %c0_5] : memref<1x128xf32, #tpu.memory_space<vmem>>, vector<1x128xf32>
    %5 = vector.broadcast %4 : vector<1x128xf32> to vector<16x128xf32>
    %6 = arith.addf %3, %5 : vector<16x128xf32>
    %c0_6 = arith.constant 0 : index
    %c0_7 = arith.constant 0 : index
    %7 = vector.load %arg5[%c0_6, %c0_7] : memref<32x128xbf16, #tpu.memory_space<vmem>>, vector<32x128xbf16>
    %c0_8 = arith.constant 0 : index
    %c0_9 = arith.constant 0 : index
    %8 = vector.load %arg2[%c0_8, %c0_9] : memref<2x32xf32, #tpu.memory_space<vmem>>, vector<2x32xf32>
    %c0_10 = arith.constant 0 : index
    %c0_11 = arith.constant 0 : index
    %9 = vector.load %arg3[%c0_10, %c0_11] : memref<2x32xf32, #tpu.memory_space<vmem>>, vector<2x32xf32>
    %10 = vector.extract_strided_slice %6 {offsets = [0, 0], sizes = [2, 128], strides = [1, 1]} : vector<16x128xf32> to vector<2x128xf32>
    %11 = arith.truncf %9 : vector<2x32xf32> to vector<2x32xbf16>
    %cst_12 = arith.constant dense<0.000000e+00> : vector<2x128xf32>
    %12 = tpu.matmul %11, %7, %cst_12 {dimension_numbers = #tpu.dot_dimension_numbers<[1], [0], [0], [1], [0, 0, 1, 1], [], []>} : vector<2x32xbf16>, vector<32x128xbf16>, vector<2x128xf32> -> vector<2x128xf32>
    %13 = arith.addf %10, %12 : vector<2x128xf32>
    %14 = arith.negf %13 : vector<2x128xf32>
    %15 = math.exp %14 : vector<2x128xf32>
    %cst_13 = arith.constant 1.000000e+00 : f32
    %16 = vector.broadcast %cst_13 : f32 to vector<2x128xf32>
    %17 = arith.addf %16, %15 : vector<2x128xf32>
    %18 = arith.divf %16, %17 : vector<2x128xf32>
    %19 = math.tanh %13 : vector<2x128xf32>
    %20 = vector.extract_strided_slice %18 {offsets = [0, 0], sizes = [2, 32], strides = [1, 1]} : vector<2x128xf32> to vector<2x32xf32>
    %21 = vector.extract_strided_slice %18 {offsets = [0, 32], sizes = [2, 32], strides = [1, 1]} : vector<2x128xf32> to vector<2x32xf32>
    %22 = vector.extract_strided_slice %19 {offsets = [0, 64], sizes = [2, 32], strides = [1, 1]} : vector<2x128xf32> to vector<2x32xf32>
    %23 = vector.extract_strided_slice %18 {offsets = [0, 96], sizes = [2, 32], strides = [1, 1]} : vector<2x128xf32> to vector<2x32xf32>
    %24 = arith.mulf %8, %20 : vector<2x32xf32>
    %25 = arith.mulf %21, %22 : vector<2x32xf32>
    %26 = arith.addf %24, %25 : vector<2x32xf32>
    %27 = math.tanh %26 : vector<2x32xf32>
    %28 = arith.mulf %23, %27 : vector<2x32xf32>
    %c0_14 = arith.constant 0 : index
    %c0_15 = arith.constant 0 : index
    %c0_16 = arith.constant 0 : index
    %29 = vector.load %arg7[%c0_14, %c0_15, %c0_16] : memref<8x2x32xf32, #tpu.memory_space<vmem>>, vector<1x2x32xf32>
    %30 = vector.shape_cast %29 : vector<1x2x32xf32> to vector<2x32xf32>
    %31 = vector.shape_cast %26 : vector<2x32xf32> to vector<1x2x32xf32>
    tpu.vector_store %arg7[%c0_14, %c0_15, %c0_16], %31 {strides = array<i32>} : memref<8x2x32xf32, #tpu.memory_space<vmem>>, vector<1x2x32xf32>,
    %c0_17 = arith.constant 0 : index
    %c0_18 = arith.constant 0 : index
    %c0_19 = arith.constant 0 : index
    %32 = vector.load %arg8[%c0_17, %c0_18, %c0_19] : memref<8x2x32xf32, #tpu.memory_space<vmem>>, vector<1x2x32xf32>
    %33 = vector.shape_cast %32 : vector<1x2x32xf32> to vector<2x32xf32>
    %34 = vector.shape_cast %28 : vector<2x32xf32> to vector<1x2x32xf32>
    tpu.vector_store %arg8[%c0_17, %c0_18, %c0_19], %34 {strides = array<i32>} : memref<8x2x32xf32, #tpu.memory_space<vmem>>, vector<1x2x32xf32>,
    %35 = vector.extract_strided_slice %6 {offsets = [2, 0], sizes = [2, 128], strides = [1, 1]} : vector<16x128xf32> to vector<2x128xf32>
    %36 = arith.truncf %28 : vector<2x32xf32> to vector<2x32xbf16>
    %cst_20 = arith.constant dense<0.000000e+00> : vector<2x128xf32>
    %37 = tpu.matmul %36, %7, %cst_20 {dimension_numbers = #tpu.dot_dimension_numbers<[1], [0], [0], [1], [0, 0, 1, 1], [], []>} : vector<2x32xbf16>, vector<32x128xbf16>, vector<2x128xf32> -> vector<2x128xf32>
    %38 = arith.addf %35, %37 : vector<2x128xf32>
    %39 = arith.negf %38 : vector<2x128xf32>
    %40 = math.exp %39 : vector<2x128xf32>
    %cst_21 = arith.constant 1.000000e+00 : f32
    %41 = vector.broadcast %cst_21 : f32 to vector<2x128xf32>
    %42 = arith.addf %41, %40 : vector<2x128xf32>
    %43 = arith.divf %41, %42 : vector<2x128xf32>
    %44 = math.tanh %38 : vector<2x128xf32>
    %45 = vector.extract_strided_slice %43 {offsets = [0, 0], sizes = [2, 32], strides = [1, 1]} : vector<2x128xf32> to vector<2x32xf32>
    %46 = vector.extract_strided_slice %43 {offsets = [0, 32], sizes = [2, 32], strides = [1, 1]} : vector<2x128xf32> to vector<2x32xf32>
    %47 = vector.extract_strided_slice %44 {offsets = [0, 64], sizes = [2, 32], strides = [1, 1]} : vector<2x128xf32> to vector<2x32xf32>
    %48 = vector.extract_strided_slice %43 {offsets = [0, 96], sizes = [2, 32], strides = [1, 1]} : vector<2x128xf32> to vector<2x32xf32>
    %49 = arith.mulf %26, %45 : vector<2x32xf32>
    %50 = arith.mulf %46, %47 : vector<2x32xf32>
    %51 = arith.addf %49, %50 : vector<2x32xf32>
    %52 = math.tanh %51 : vector<2x32xf32>
    %53 = arith.mulf %48, %52 : vector<2x32xf32>
    %c1 = arith.constant 1 : index
    %c0_22 = arith.constant 0 : index
    %c0_23 = arith.constant 0 : index
    %54 = vector.load %arg7[%c1, %c0_22, %c0_23] : memref<8x2x32xf32, #tpu.memory_space<vmem>>, vector<1x2x32xf32>
    %55 = vector.shape_cast %54 : vector<1x2x32xf32> to vector<2x32xf32>
    %56 = vector.shape_cast %51 : vector<2x32xf32> to vector<1x2x32xf32>
    tpu.vector_store %arg7[%c1, %c0_22, %c0_23], %56 {strides = array<i32>} : memref<8x2x32xf32, #tpu.memory_space<vmem>>, vector<1x2x32xf32>,
    %c1_24 = arith.constant 1 : index
    %c0_25 = arith.constant 0 : index
    %c0_26 = arith.constant 0 : index
    %57 = vector.load %arg8[%c1_24, %c0_25, %c0_26] : memref<8x2x32xf32, #tpu.memory_space<vmem>>, vector<1x2x32xf32>
    %58 = vector.shape_cast %57 : vector<1x2x32xf32> to vector<2x32xf32>
    %59 = vector.shape_cast %53 : vector<2x32xf32> to vector<1x2x32xf32>
    tpu.vector_store %arg8[%c1_24, %c0_25, %c0_26], %59 {strides = array<i32>} : memref<8x2x32xf32, #tpu.memory_space<vmem>>, vector<1x2x32xf32>,
    %60 = vector.extract_strided_slice %6 {offsets = [4, 0], sizes = [2, 128], strides = [1, 1]} : vector<16x128xf32> to vector<2x128xf32>
    %61 = arith.truncf %53 : vector<2x32xf32> to vector<2x32xbf16>
    %cst_27 = arith.constant dense<0.000000e+00> : vector<2x128xf32>
    %62 = tpu.matmul %61, %7, %cst_27 {dimension_numbers = #tpu.dot_dimension_numbers<[1], [0], [0], [1], [0, 0, 1, 1], [], []>} : vector<2x32xbf16>, vector<32x128xbf16>, vector<2x128xf32> -> vector<2x128xf32>
    %63 = arith.addf %60, %62 : vector<2x128xf32>
    %64 = arith.negf %63 : vector<2x128xf32>
    %65 = math.exp %64 : vector<2x128xf32>
    %cst_28 = arith.constant 1.000000e+00 : f32
    %66 = vector.broadcast %cst_28 : f32 to vector<2x128xf32>
    %67 = arith.addf %66, %65 : vector<2x128xf32>
    %68 = arith.divf %66, %67 : vector<2x128xf32>
    %69 = math.tanh %63 : vector<2x128xf32>
    %70 = vector.extract_strided_slice %68 {offsets = [0, 0], sizes = [2, 32], strides = [1, 1]} : vector<2x128xf32> to vector<2x32xf32>
    %71 = vector.extract_strided_slice %68 {offsets = [0, 32], sizes = [2, 32], strides = [1, 1]} : vector<2x128xf32> to vector<2x32xf32>
    %72 = vector.extract_strided_slice %69 {offsets = [0, 64], sizes = [2, 32], strides = [1, 1]} : vector<2x128xf32> to vector<2x32xf32>
    %73 = vector.extract_strided_slice %68 {offsets = [0, 96], sizes = [2, 32], strides = [1, 1]} : vector<2x128xf32> to vector<2x32xf32>
    %74 = arith.mulf %51, %70 : vector<2x32xf32>
    %75 = arith.mulf %71, %72 : vector<2x32xf32>
    %76 = arith.addf %74, %75 : vector<2x32xf32>
    %77 = math.tanh %76 : vector<2x32xf32>
    %78 = arith.mulf %73, %77 : vector<2x32xf32>
    %c2 = arith.constant 2 : index
    %c0_29 = arith.constant 0 : index
    %c0_30 = arith.constant 0 : index
    %79 = vector.load %arg7[%c2, %c0_29, %c0_30] : memref<8x2x32xf32, #tpu.memory_space<vmem>>, vector<1x2x32xf32>
    %80 = vector.shape_cast %79 : vector<1x2x32xf32> to vector<2x32xf32>
    %81 = vector.shape_cast %76 : vector<2x32xf32> to vector<1x2x32xf32>
    tpu.vector_store %arg7[%c2, %c0_29, %c0_30], %81 {strides = array<i32>} : memref<8x2x32xf32, #tpu.memory_space<vmem>>, vector<1x2x32xf32>,
    %c2_31 = arith.constant 2 : index
    %c0_32 = arith.constant 0 : index
    %c0_33 = arith.constant 0 : index
    %82 = vector.load %arg8[%c2_31, %c0_32, %c0_33] : memref<8x2x32xf32, #tpu.memory_space<vmem>>, vector<1x2x32xf32>
    %83 = vector.shape_cast %82 : vector<1x2x32xf32> to vector<2x32xf32>
    %84 = vector.shape_cast %78 : vector<2x32xf32> to vector<1x2x32xf32>
    tpu.vector_store %arg8[%c2_31, %c0_32, %c0_33], %84 {strides = array<i32>} : memref<8x2x32xf32, #tpu.memory_space<vmem>>, vector<1x2x32xf32>,
    %85 = vector.extract_strided_slice %6 {offsets = [6, 0], sizes = [2, 128], strides = [1, 1]} : vector<16x128xf32> to vector<2x128xf32>
    %86 = arith.truncf %78 : vector<2x32xf32> to vector<2x32xbf16>
    %cst_34 = arith.constant dense<0.000000e+00> : vector<2x128xf32>
    %87 = tpu.matmul %86, %7, %cst_34 {dimension_numbers = #tpu.dot_dimension_numbers<[1], [0], [0], [1], [0, 0, 1, 1], [], []>} : vector<2x32xbf16>, vector<32x128xbf16>, vector<2x128xf32> -> vector<2x128xf32>
    %88 = arith.addf %85, %87 : vector<2x128xf32>
    %89 = arith.negf %88 : vector<2x128xf32>
    %90 = math.exp %89 : vector<2x128xf32>
    %cst_35 = arith.constant 1.000000e+00 : f32
    %91 = vector.broadcast %cst_35 : f32 to vector<2x128xf32>
    %92 = arith.addf %91, %90 : vector<2x128xf32>
    %93 = arith.divf %91, %92 : vector<2x128xf32>
    %94 = math.tanh %88 : vector<2x128xf32>
    %95 = vector.extract_strided_slice %93 {offsets = [0, 0], sizes = [2, 32], strides = [1, 1]} : vector<2x128xf32> to vector<2x32xf32>
    %96 = vector.extract_strided_slice %93 {offsets = [0, 32], sizes = [2, 32], strides = [1, 1]} : vector<2x128xf32> to vector<2x32xf32>
    %97 = vector.extract_strided_slice %94 {offsets = [0, 64], sizes = [2, 32], strides = [1, 1]} : vector<2x128xf32> to vector<2x32xf32>
    %98 = vector.extract_strided_slice %93 {offsets = [0, 96], sizes = [2, 32], strides = [1, 1]} : vector<2x128xf32> to vector<2x32xf32>
    %99 = arith.mulf %76, %95 : vector<2x32xf32>
    %100 = arith.mulf %96, %97 : vector<2x32xf32>
    %101 = arith.addf %99, %100 : vector<2x32xf32>
    %102 = math.tanh %101 : vector<2x32xf32>
    %103 = arith.mulf %98, %102 : vector<2x32xf32>
    %c3 = arith.constant 3 : index
    %c0_36 = arith.constant 0 : index
    %c0_37 = arith.constant 0 : index
    %104 = vector.load %arg7[%c3, %c0_36, %c0_37] : memref<8x2x32xf32, #tpu.memory_space<vmem>>, vector<1x2x32xf32>
    %105 = vector.shape_cast %104 : vector<1x2x32xf32> to vector<2x32xf32>
    %106 = vector.shape_cast %101 : vector<2x32xf32> to vector<1x2x32xf32>
    tpu.vector_store %arg7[%c3, %c0_36, %c0_37], %106 {strides = array<i32>} : memref<8x2x32xf32, #tpu.memory_space<vmem>>, vector<1x2x32xf32>,
    %c3_38 = arith.constant 3 : index
    %c0_39 = arith.constant 0 : index
    %c0_40 = arith.constant 0 : index
    %107 = vector.load %arg8[%c3_38, %c0_39, %c0_40] : memref<8x2x32xf32, #tpu.memory_space<vmem>>, vector<1x2x32xf32>
    %108 = vector.shape_cast %107 : vector<1x2x32xf32> to vector<2x32xf32>
    %109 = vector.shape_cast %103 : vector<2x32xf32> to vector<1x2x32xf32>
    tpu.vector_store %arg8[%c3_38, %c0_39, %c0_40], %109 {strides = array<i32>} : memref<8x2x32xf32, #tpu.memory_space<vmem>>, vector<1x2x32xf32>,
    %110 = vector.extract_strided_slice %6 {offsets = [8, 0], sizes = [2, 128], strides = [1, 1]} : vector<16x128xf32> to vector<2x128xf32>
    %111 = arith.truncf %103 : vector<2x32xf32> to vector<2x32xbf16>
    %cst_41 = arith.constant dense<0.000000e+00> : vector<2x128xf32>
    %112 = tpu.matmul %111, %7, %cst_41 {dimension_numbers = #tpu.dot_dimension_numbers<[1], [0], [0], [1], [0, 0, 1, 1], [], []>} : vector<2x32xbf16>, vector<32x128xbf16>, vector<2x128xf32> -> vector<2x128xf32>
    %113 = arith.addf %110, %112 : vector<2x128xf32>
    %114 = arith.negf %113 : vector<2x128xf32>
    %115 = math.exp %114 : vector<2x128xf32>
    %cst_42 = arith.constant 1.000000e+00 : f32
    %116 = vector.broadcast %cst_42 : f32 to vector<2x128xf32>
    %117 = arith.addf %116, %115 : vector<2x128xf32>
    %118 = arith.divf %116, %117 : vector<2x128xf32>
    %119 = math.tanh %113 : vector<2x128xf32>
    %120 = vector.extract_strided_slice %118 {offsets = [0, 0], sizes = [2, 32], strides = [1, 1]} : vector<2x128xf32> to vector<2x32xf32>
    %121 = vector.extract_strided_slice %118 {offsets = [0, 32], sizes = [2, 32], strides = [1, 1]} : vector<2x128xf32> to vector<2x32xf32>
    %122 = vector.extract_strided_slice %119 {offsets = [0, 64], sizes = [2, 32], strides = [1, 1]} : vector<2x128xf32> to vector<2x32xf32>
    %123 = vector.extract_strided_slice %118 {offsets = [0, 96], sizes = [2, 32], strides = [1, 1]} : vector<2x128xf32> to vector<2x32xf32>
    %124 = arith.mulf %101, %120 : vector<2x32xf32>
    %125 = arith.mulf %121, %122 : vector<2x32xf32>
    %126 = arith.addf %124, %125 : vector<2x32xf32>
    %127 = math.tanh %126 : vector<2x32xf32>
    %128 = arith.mulf %123, %127 : vector<2x32xf32>
    %c4 = arith.constant 4 : index
    %c0_43 = arith.constant 0 : index
    %c0_44 = arith.constant 0 : index
    %129 = vector.load %arg7[%c4, %c0_43, %c0_44] : memref<8x2x32xf32, #tpu.memory_space<vmem>>, vector<1x2x32xf32>
    %130 = vector.shape_cast %129 : vector<1x2x32xf32> to vector<2x32xf32>
    %131 = vector.shape_cast %126 : vector<2x32xf32> to vector<1x2x32xf32>
    tpu.vector_store %arg7[%c4, %c0_43, %c0_44], %131 {strides = array<i32>} : memref<8x2x32xf32, #tpu.memory_space<vmem>>, vector<1x2x32xf32>,
    %c4_45 = arith.constant 4 : index
    %c0_46 = arith.constant 0 : index
    %c0_47 = arith.constant 0 : index
    %132 = vector.load %arg8[%c4_45, %c0_46, %c0_47] : memref<8x2x32xf32, #tpu.memory_space<vmem>>, vector<1x2x32xf32>
    %133 = vector.shape_cast %132 : vector<1x2x32xf32> to vector<2x32xf32>
    %134 = vector.shape_cast %128 : vector<2x32xf32> to vector<1x2x32xf32>
    tpu.vector_store %arg8[%c4_45, %c0_46, %c0_47], %134 {strides = array<i32>} : memref<8x2x32xf32, #tpu.memory_space<vmem>>, vector<1x2x32xf32>,
    %135 = vector.extract_strided_slice %6 {offsets = [10, 0], sizes = [2, 128], strides = [1, 1]} : vector<16x128xf32> to vector<2x128xf32>
    %136 = arith.truncf %128 : vector<2x32xf32> to vector<2x32xbf16>
    %cst_48 = arith.constant dense<0.000000e+00> : vector<2x128xf32>
    %137 = tpu.matmul %136, %7, %cst_48 {dimension_numbers = #tpu.dot_dimension_numbers<[1], [0], [0], [1], [0, 0, 1, 1], [], []>} : vector<2x32xbf16>, vector<32x128xbf16>, vector<2x128xf32> -> vector<2x128xf32>
    %138 = arith.addf %135, %137 : vector<2x128xf32>
    %139 = arith.negf %138 : vector<2x128xf32>
    %140 = math.exp %139 : vector<2x128xf32>
    %cst_49 = arith.constant 1.000000e+00 : f32
    %141 = vector.broadcast %cst_49 : f32 to vector<2x128xf32>
    %142 = arith.addf %141, %140 : vector<2x128xf32>
    %143 = arith.divf %141, %142 : vector<2x128xf32>
    %144 = math.tanh %138 : vector<2x128xf32>
    %145 = vector.extract_strided_slice %143 {offsets = [0, 0], sizes = [2, 32], strides = [1, 1]} : vector<2x128xf32> to vector<2x32xf32>
    %146 = vector.extract_strided_slice %143 {offsets = [0, 32], sizes = [2, 32], strides = [1, 1]} : vector<2x128xf32> to vector<2x32xf32>
    %147 = vector.extract_strided_slice %144 {offsets = [0, 64], sizes = [2, 32], strides = [1, 1]} : vector<2x128xf32> to vector<2x32xf32>
    %148 = vector.extract_strided_slice %143 {offsets = [0, 96], sizes = [2, 32], strides = [1, 1]} : vector<2x128xf32> to vector<2x32xf32>
    %149 = arith.mulf %126, %145 : vector<2x32xf32>
    %150 = arith.mulf %146, %147 : vector<2x32xf32>
    %151 = arith.addf %149, %150 : vector<2x32xf32>
    %152 = math.tanh %151 : vector<2x32xf32>
    %153 = arith.mulf %148, %152 : vector<2x32xf32>
    %c5 = arith.constant 5 : index
    %c0_50 = arith.constant 0 : index
    %c0_51 = arith.constant 0 : index
    %154 = vector.load %arg7[%c5, %c0_50, %c0_51] : memref<8x2x32xf32, #tpu.memory_space<vmem>>, vector<1x2x32xf32>
    %155 = vector.shape_cast %154 : vector<1x2x32xf32> to vector<2x32xf32>
    %156 = vector.shape_cast %151 : vector<2x32xf32> to vector<1x2x32xf32>
    tpu.vector_store %arg7[%c5, %c0_50, %c0_51], %156 {strides = array<i32>} : memref<8x2x32xf32, #tpu.memory_space<vmem>>, vector<1x2x32xf32>,
    %c5_52 = arith.constant 5 : index
    %c0_53 = arith.constant 0 : index
    %c0_54 = arith.constant 0 : index
    %157 = vector.load %arg8[%c5_52, %c0_53, %c0_54] : memref<8x2x32xf32, #tpu.memory_space<vmem>>, vector<1x2x32xf32>
    %158 = vector.shape_cast %157 : vector<1x2x32xf32> to vector<2x32xf32>
    %159 = vector.shape_cast %153 : vector<2x32xf32> to vector<1x2x32xf32>
    tpu.vector_store %arg8[%c5_52, %c0_53, %c0_54], %159 {strides = array<i32>} : memref<8x2x32xf32, #tpu.memory_space<vmem>>, vector<1x2x32xf32>,
    %160 = vector.extract_strided_slice %6 {offsets = [12, 0], sizes = [2, 128], strides = [1, 1]} : vector<16x128xf32> to vector<2x128xf32>
    %161 = arith.truncf %153 : vector<2x32xf32> to vector<2x32xbf16>
    %cst_55 = arith.constant dense<0.000000e+00> : vector<2x128xf32>
    %162 = tpu.matmul %161, %7, %cst_55 {dimension_numbers = #tpu.dot_dimension_numbers<[1], [0], [0], [1], [0, 0, 1, 1], [], []>} : vector<2x32xbf16>, vector<32x128xbf16>, vector<2x128xf32> -> vector<2x128xf32>
    %163 = arith.addf %160, %162 : vector<2x128xf32>
    %164 = arith.negf %163 : vector<2x128xf32>
    %165 = math.exp %164 : vector<2x128xf32>
    %cst_56 = arith.constant 1.000000e+00 : f32
    %166 = vector.broadcast %cst_56 : f32 to vector<2x128xf32>
    %167 = arith.addf %166, %165 : vector<2x128xf32>
    %168 = arith.divf %166, %167 : vector<2x128xf32>
    %169 = math.tanh %163 : vector<2x128xf32>
    %170 = vector.extract_strided_slice %168 {offsets = [0, 0], sizes = [2, 32], strides = [1, 1]} : vector<2x128xf32> to vector<2x32xf32>
    %171 = vector.extract_strided_slice %168 {offsets = [0, 32], sizes = [2, 32], strides = [1, 1]} : vector<2x128xf32> to vector<2x32xf32>
    %172 = vector.extract_strided_slice %169 {offsets = [0, 64], sizes = [2, 32], strides = [1, 1]} : vector<2x128xf32> to vector<2x32xf32>
    %173 = vector.extract_strided_slice %168 {offsets = [0, 96], sizes = [2, 32], strides = [1, 1]} : vector<2x128xf32> to vector<2x32xf32>
    %174 = arith.mulf %151, %170 : vector<2x32xf32>
    %175 = arith.mulf %171, %172 : vector<2x32xf32>
    %176 = arith.addf %174, %175 : vector<2x32xf32>
    %177 = math.tanh %176 : vector<2x32xf32>
    %178 = arith.mulf %173, %177 : vector<2x32xf32>
    %c6 = arith.constant 6 : index
    %c0_57 = arith.constant 0 : index
    %c0_58 = arith.constant 0 : index
    %179 = vector.load %arg7[%c6, %c0_57, %c0_58] : memref<8x2x32xf32, #tpu.memory_space<vmem>>, vector<1x2x32xf32>
    %180 = vector.shape_cast %179 : vector<1x2x32xf32> to vector<2x32xf32>
    %181 = vector.shape_cast %176 : vector<2x32xf32> to vector<1x2x32xf32>
    tpu.vector_store %arg7[%c6, %c0_57, %c0_58], %181 {strides = array<i32>} : memref<8x2x32xf32, #tpu.memory_space<vmem>>, vector<1x2x32xf32>,
    %c6_59 = arith.constant 6 : index
    %c0_60 = arith.constant 0 : index
    %c0_61 = arith.constant 0 : index
    %182 = vector.load %arg8[%c6_59, %c0_60, %c0_61] : memref<8x2x32xf32, #tpu.memory_space<vmem>>, vector<1x2x32xf32>
    %183 = vector.shape_cast %182 : vector<1x2x32xf32> to vector<2x32xf32>
    %184 = vector.shape_cast %178 : vector<2x32xf32> to vector<1x2x32xf32>
    tpu.vector_store %arg8[%c6_59, %c0_60, %c0_61], %184 {strides = array<i32>} : memref<8x2x32xf32, #tpu.memory_space<vmem>>, vector<1x2x32xf32>,
    %185 = vector.extract_strided_slice %6 {offsets = [14, 0], sizes = [2, 128], strides = [1, 1]} : vector<16x128xf32> to vector<2x128xf32>
    %186 = arith.truncf %178 : vector<2x32xf32> to vector<2x32xbf16>
    %cst_62 = arith.constant dense<0.000000e+00> : vector<2x128xf32>
    %187 = tpu.matmul %186, %7, %cst_62 {dimension_numbers = #tpu.dot_dimension_numbers<[1], [0], [0], [1], [0, 0, 1, 1], [], []>} : vector<2x32xbf16>, vector<32x128xbf16>, vector<2x128xf32> -> vector<2x128xf32>
    %188 = arith.addf %185, %187 : vector<2x128xf32>
    %189 = arith.negf %188 : vector<2x128xf32>
    %190 = math.exp %189 : vector<2x128xf32>
    %cst_63 = arith.constant 1.000000e+00 : f32
    %191 = vector.broadcast %cst_63 : f32 to vector<2x128xf32>
    %192 = arith.addf %191, %190 : vector<2x128xf32>
    %193 = arith.divf %191, %192 : vector<2x128xf32>
    %194 = math.tanh %188 : vector<2x128xf32>
    %195 = vector.extract_strided_slice %193 {offsets = [0, 0], sizes = [2, 32], strides = [1, 1]} : vector<2x128xf32> to vector<2x32xf32>
    %196 = vector.extract_strided_slice %193 {offsets = [0, 32], sizes = [2, 32], strides = [1, 1]} : vector<2x128xf32> to vector<2x32xf32>
    %197 = vector.extract_strided_slice %194 {offsets = [0, 64], sizes = [2, 32], strides = [1, 1]} : vector<2x128xf32> to vector<2x32xf32>
    %198 = vector.extract_strided_slice %193 {offsets = [0, 96], sizes = [2, 32], strides = [1, 1]} : vector<2x128xf32> to vector<2x32xf32>
    %199 = arith.mulf %176, %195 : vector<2x32xf32>
    %200 = arith.mulf %196, %197 : vector<2x32xf32>
    %201 = arith.addf %199, %200 : vector<2x32xf32>
    %202 = math.tanh %201 : vector<2x32xf32>
    %203 = arith.mulf %198, %202 : vector<2x32xf32>
    %c7 = arith.constant 7 : index
    %c0_64 = arith.constant 0 : index
    %c0_65 = arith.constant 0 : index
    %204 = vector.load %arg7[%c7, %c0_64, %c0_65] : memref<8x2x32xf32, #tpu.memory_space<vmem>>, vector<1x2x32xf32>
    %205 = vector.shape_cast %204 : vector<1x2x32xf32> to vector<2x32xf32>
    %206 = vector.shape_cast %201 : vector<2x32xf32> to vector<1x2x32xf32>
    tpu.vector_store %arg7[%c7, %c0_64, %c0_65], %206 {strides = array<i32>} : memref<8x2x32xf32, #tpu.memory_space<vmem>>, vector<1x2x32xf32>,
    %c7_66 = arith.constant 7 : index
    %c0_67 = arith.constant 0 : index
    %c0_68 = arith.constant 0 : index
    %207 = vector.load %arg8[%c7_66, %c0_67, %c0_68] : memref<8x2x32xf32, #tpu.memory_space<vmem>>, vector<1x2x32xf32>
    %208 = vector.shape_cast %207 : vector<1x2x32xf32> to vector<2x32xf32>
    %209 = vector.shape_cast %203 : vector<2x32xf32> to vector<1x2x32xf32>
    tpu.vector_store %arg8[%c7_66, %c0_67, %c0_68], %209 {strides = array<i32>} : memref<8x2x32xf32, #tpu.memory_space<vmem>>, vector<1x2x32xf32>,
    return
  }
  func.func @transform_0(%arg0: i32) -> (i32, i32, i32) {
    %c0_i32 = arith.constant 0 : i32
    %c0_i32_0 = arith.constant 0 : i32
    %c0_i32_1 = arith.constant 0 : i32
    %c0_i32_2 = arith.constant 0 : i32
    return %c0_i32, %c0_i32_0, %c0_i32_1 : i32, i32, i32
  }
  func.func @transform_1(%arg0: i32) -> (i32, i32) {
    %c0_i32 = arith.constant 0 : i32
    %c0_i32_0 = arith.constant 0 : i32
    %c0_i32_1 = arith.constant 0 : i32
    return %c0_i32, %c0_i32_0 : i32, i32
  }
  func.func @transform_2(%arg0: i32) -> (i32, i32) {
    %c0_i32 = arith.constant 0 : i32
    %c0_i32_0 = arith.constant 0 : i32
    %c0_i32_1 = arith.constant 0 : i32
    return %c0_i32, %c0_i32_0 : i32, i32
  }
  func.func @transform_3(%arg0: i32) -> (i32, i32) {
    %c0_i32 = arith.constant 0 : i32
    %c0_i32_0 = arith.constant 0 : i32
    %c0_i32_1 = arith.constant 0 : i32
    return %c0_i32, %c0_i32_0 : i32, i32
  }
  func.func @transform_4(%arg0: i32) -> (i32, i32) {
    %c0_i32 = arith.constant 0 : i32
    %c0_i32_0 = arith.constant 0 : i32
    %c0_i32_1 = arith.constant 0 : i32
    return %c0_i32, %c0_i32_0 : i32, i32
  }
  func.func @transform_5(%arg0: i32) -> (i32, i32) {
    %c0_i32 = arith.constant 0 : i32
    %c0_i32_0 = arith.constant 0 : i32
    %c0_i32_1 = arith.constant 0 : i32
    return %c0_i32, %c0_i32_0 : i32, i32
  }
  func.func @transform_6(%arg0: i32) -> (i32, i32, i32) {
    %c0_i32 = arith.constant 0 : i32
    %c0_i32_0 = arith.constant 0 : i32
    %c0_i32_1 = arith.constant 0 : i32
    %c0_i32_2 = arith.constant 0 : i32
    return %c0_i32, %c0_i32_0, %c0_i32_1 : i32, i32, i32
  }
  func.func @transform_7(%arg0: i32) -> (i32, i32, i32) {
    %c0_i32 = arith.constant 0 : i32
    %c0_i32_0 = arith.constant 0 : i32
    %c0_i32_1 = arith.constant 0 : i32
    %c0_i32_2 = arith.constant 0 : i32
    return %c0_i32, %c0_i32_0, %c0_i32_1 : i32, i32, i32
  }
}

</mosaic_0001>

<bundles_post_ra>
// kernel: tpu_custom_call.1
= control target key start
LH: loop header
LB: loop body
LE: loop exit
PB: predicated region body
PF: predicated region fallthrough
CT: control target
= control target key end

     0   :  { %13 = vsyncpa [#allocation3], 0  ;;  %s1281_s0 = inlined_call_operand.hbm [shape: bf16[8,2,16], index: 0, kind: input, shape index: {}]   ;;  %s1282_s1 = inlined_call_operand.hbm [shape: f32[2,32], index: 1, kind: input, shape index: {}]   ;;  %s1283_s2 = inlined_call_operand.hbm [shape: f32[2,32], index: 2, kind: input, shape index: {}]   ;;  %s1284_s3 = inlined_call_operand.hbm [shape: bf16[16,128], index: 3, kind: input, shape index: {}]   ;;  %s1285_s4 = inlined_call_operand.hbm [shape: bf16[32,128], index: 4, kind: input, shape index: {}]   ;;  %s1286_s5 = inlined_call_operand.vmem [shape: f32[1,128], index: 5, kind: input, shape index: {}]   ;;  %s1287_s6 = inlined_call_operand.hbm [shape: f32[8,2,32], index: 6, kind: output, shape index: {0}]   ;;  %s1288_s7 = inlined_call_operand.hbm [shape: f32[8,2,32], index: 7, kind: output, shape index: {1}]  }
   0x1   :  { %14 = vsyncpa [#allocation6], 0 }
   0x2   :  { %15 = vsyncpa [#allocation9], 0 }
   0x3   :  { %16 = vsyncpa [#allocation4], 0  ;;  %s36_s26 = sshll.u32 %s1282_s1, 4  ;;  %s37_s26 = int_to_ptr.hbm [resolvable:$true] %s36_s26 }
   0x4   :  { %17 = vsyncpa [#allocation13], 0  ;;  %s1090_s27 = smov [#allocation5]   ;;  %s57_s8 = sshll.u32 %s1284_s3, 4  ;;  %s58_s8 = int_to_ptr.hbm [resolvable:$true] %s57_s8 }
   0x5   :  { %s38_s28 = sshll.u32 %s1090_s27, 4  ;;  %s1091_s9 = smov [#allocation8]   ;;  %s39_s28 = int_to_ptr.vmem [resolvable:$true] %s38_s28 }
   0x6   :  { %41 = dma.hbm_to_vmem [thread:$0]  %s37_s26, 32, %s39_s28, [#allocation6]  }
   0x7   :  { %s59_s10 = sshll.u32 %s1091_s9, 4  ;;  %s1092_s11 = smov 64   ;;  %s60_s10 = int_to_ptr.vmem [resolvable:$true] %s59_s10 }
   0x8   :  { %s1093_s12 = smov 4   ;;  %s22_s1 = sshll.u32 %s1281_s0, 4  ;;  %s23_s1 = int_to_ptr.hbm [resolvable:$true] %s22_s1 }
   0x9   :  { %65 = dma.hbm_to_vmem [thread:$0]  %s58_s8, 128, %s60_s10, [#allocation9], %s1092_s11, %s1092_s11, %s1093_s12  }
   0xa   :  { %s1094_s15 = smov [#allocation2]   ;;  %s47_s3 = sshll.u32 %s1283_s2, 4  ;;  %s48_s3 = int_to_ptr.hbm [resolvable:$true] %s47_s3 }
   0xb   :  { %s24_s16 = sshll.u32 %s1094_s15, 4  ;;  %s1095_s19 = smov 16   ;;  %s25_s16 = int_to_ptr.vmem [resolvable:$true] %s24_s16 }
   0xc   :  { %s1096_s20 = smov 1   ;;  %s1097_s21 = smov [#allocation7]  }
   0xd   :  { %30 = dma.hbm_to_vmem [thread:$0]  %s23_s1, 128, %s25_s16, [#allocation3], %s1095_s19, %s1095_s19, %s1096_s20  }
   0xe   :  { %s49_s22 = sshll.u32 %s1097_s21, 4  ;;  %s70_s25 = sshll.u32 %s1285_s4, 4  ;;  %s50_s22 = int_to_ptr.vmem [resolvable:$true] %s49_s22  ;;  %s71_s25 = int_to_ptr.hbm [resolvable:$true] %s70_s25 }
   0xf   :  { %52 = dma.hbm_to_vmem [thread:$0]  %s48_s3, 32, %s50_s22, [#allocation6]  }
  0x10   :  { %s1098_s0 = smov [#allocation10]  }
  0x11   :  { %s72_s26 = sshll.u32 %s1098_s0, 4  ;;  %s73_s26 = int_to_ptr.vmem [resolvable:$true] %s72_s26 }
  0x12   :  { %78 = dma.hbm_to_vmem [thread:$0]  %s71_s25, 256, %s73_s26, [#allocation9], %s1092_s11, %s1092_s11, %s1093_s12  }
  0x13   :  { %1080 = dma.done.wait [#allocation3], 128  }
  0x14   :  { %1081 = vsyncadd [#allocation3], 4294967168 }
  0x15   :  { %1082 = dma.done.wait [#allocation6], 64  }
  0x16   :  { %1083 = vsyncadd [#allocation6], 4294967232 }
  0x17   :  { %1084 = dma.done.wait [#allocation9], 384  }
  0x18   :  { %1085 = vsyncadd [#allocation9], 4294966912  ;;  %v832_v0 = vld [vmem:[#allocation10 + $0x8] sm:$0xff]  ;;  %v830_v1 = vld [vmem:[#allocation8] sm:$0xff]  ;;  %vm182_vm0 = vcmask 261120   ;;  %vm146_vm1 = vcmask 130048  }
  0x19   :  { %v102_v2 = vld [vmem:[#allocation2] sm:$0x1]  ;;  %v103_v3 = vld [vmem:[#allocation2 + $0x1] sm:$0x1]  ;;  %192 = vmatpush.bf16.msra.mxu1 %v832_v0  ;;  %156 = vmatpush.bf16.msra.mxu0 %v830_v1  ;;  %v831_v4 = vld [vmem:[#allocation10] sm:$0xff]  ;;  %s1099_s27 = smov 96  }
  0x1a   :  { %v104_v5 = vld [vmem:[#allocation2 + $0x2] sm:$0x1]  ;;  %v105_v6 = vld [vmem:[#allocation2 + $0x3] sm:$0x1]  ;;  %v106_v7 = vld [vmem:[#allocation2 + $0x4] sm:$0x1]  ;;  %257 = vmatpush.bf16.msra.mxu2 %v832_v0  ;;  %333 = vmatpush.bf16.msra.mxu3 %v832_v0 }
  0x1b   :  { %117 = vst [vmem:[#allocation1] ss:$9 sm:$0xff] %v102_v2  ;;  %v168_v8 = vld [vmem:[#allocation7] sm:$0x3]  ;;  %v107_v9 = vld [vmem:[#allocation2 + $0x5] sm:$0x1] }
  0x1c   :  { %120 = vst [vmem:[#allocation1 + $0x1] ss:$9 sm:$0xff] %v103_v3  ;;  %v169_v10 = vpack.c.bf16 %v168_v8, %v168_v8  ;;  %v108_v11 = vld [vmem:[#allocation2 + $0x6] sm:$0x1]  ;;  %v109_v12 = vld [vmem:[#allocation2 + $0x7] sm:$0x1] }
  0x1d   :  { %409 = vmatpush.bf16.msrb.mxu0 %v832_v0  ;;  %123 = vst [vmem:[#allocation1 + $0x2] ss:$9 sm:$0xff] %v104_v5  ;;  %193 = vmatpush.bf16.msra.mxu1 %v831_v4  ;;  %v1163_v15 = vld [vmem:[%s1286_s5] ss:$0 sm:$0xff]  ;;  %v167_v36 = vld [vmem:[#allocation5] sm:$0x3] }
  0x1e   :  { %126 = vst [vmem:[#allocation1 + $0x3] ss:$9 sm:$0xff] %v105_v6  ;;  %258 = vmatpush.bf16.msra.mxu2 %v831_v4  ;;  %334 = vmatpush.bf16.msra.mxu3 %v831_v4  ;;  %vm237_vm6 = vcmask 254976   ;;  %s1100_s5 = smov 32   ;;  %s1101_s28 = smov [#allocation11]  }
  0x1f   :  { %129 = vst [vmem:[#allocation1 + $0x4] ss:$9 sm:$0xff] %v106_v7  ;;  %s766_s29 = sshll.u32 %s1101_s28, 4  ;;  %s768_s9 = sshll.u32 %s1287_s6, 4  ;;  %s767_s29 = int_to_ptr.vmem [resolvable:$true] %s766_s29  ;;  %s769_s9 = int_to_ptr.hbm [resolvable:$true] %s768_s9 }
  0x20   :  { %132 = vst [vmem:[#allocation1 + $0x5] ss:$9 sm:$0xff] %v107_v9  ;;  %814 = vmatmul.msk.bf16.vlgmr.msra.gmra.mxu1 %vm182_vm0, %v169_v10  ;;  %s1102_s10 = smov 2   ;;  %s1103_s11 = smov [#allocation12]  }
  0x21   :  { %410 = vmatpush.bf16.msrb.mxu0 %v831_v4  ;;  %485 = vmatpush.bf16.msrb.mxu1 %v832_v0  ;;  %135 = vst [vmem:[#allocation1 + $0x6] ss:$9 sm:$0xff] %v108_v11  ;;  %s779_s12 = sshll.u32 %s1103_s11, 4  ;;  %s781_s14 = sshll.u32 %s1288_s7, 4  ;;  %s780_s12 = int_to_ptr.vmem [resolvable:$true] %s779_s12  ;;  %s782_s14 = int_to_ptr.hbm [resolvable:$true] %s781_s14 }
  0x22   :  { %551 = vmatpush.bf16.msrb.mxu2 %v832_v0  ;;  %138 = vst [vmem:[#allocation1 + $0x7] ss:$9 sm:$0xff] %v109_v12  ;;  %626 = vmatpush.bf16.msrb.mxu3 %v832_v0 }
  0x25   :  { %486 = vmatpush.bf16.msrb.mxu1 %v831_v4 }
  0x26   :  { %552 = vmatpush.bf16.msrb.mxu2 %v831_v4  ;;  %627 = vmatpush.bf16.msrb.mxu3 %v831_v4 }
  0x29   :  { %v139_v13 = vld [vmem:[#allocation1] sm:$0xff] }
  0x2a   :  { %805 = vmatmul.msk.bf16.vlgmr.msra.gmra.mxu0 %vm146_vm1, %v139_v13 }
  0x2b   :  { %701 = vmatpush.bf16.msra.mxu0 %v832_v0 }
  0x2f   :  { %702 = vmatpush.bf16.msra.mxu0 %v831_v4 }
  0x9d   :  { %v195_v14 = vpop.f32.mrf.mxu1 }
  0xa5   :  { %v197_v16 = vpop.f32.mrf.mxu1 }
  0xa7   :  { %v158_v17 = vpop.f32.mrf.mxu0 }
  0xa8   :  { %v1166_v18 = vadd.f32 %v1163_v15, %v158_v17 }
  0xaa   :  { %v199_v19 = vadd.f32 %v195_v14, %v1166_v18 }
  0xac   :  { %848 = vtanh.f32 %v199_v19  ;;  %v815_v21 = vmul.f32 -1.442695, %v199_v19 }
  0xae   :  { %850 = vpow2.f32 %v815_v21 }
  0xb2   :  { %v849_v20 = vpop.eup %848 }
  0xb3   :  { %222 = vrot.lane.b32.xlu0 %v849_v20, %s1099_s27 }
  0xb4   :  { %v851_v22 = vpop.eup %850 }
  0xb5   :  { %v203_v23 = vadd.f32 1.0, %v851_v22 }
  0xb7   :  { %852 = vrcp.f32 %v203_v23  ;;  %v215_v29 = vand.u32 2147483648, %v203_v23  ;;  %vm209_vm3 = vweird.f32 %v203_v23  ;;  %v213_v30 = vand.u32 2147483647, %v203_v23 }
  0xb9   :  { %v216_v32 = vor.u32 1.1754944e-38, %v215_v29  ;;  %vm214_vm5 = vcmp.eq.f32.partialorder %v213_v30, 8.507059e+37 }
  0xbd   :  { %v853_v24 = vpop.eup %852 }
  0xbe   :  { %v205_v25 = vmul.f32 %v853_v24, %v203_v23  ;;  %vm210_vm2 = vweird.f32 %v853_v24 }
  0xbf   :  { %vm211_vm4 = vmor %vm209_vm3, %vm210_vm2 }
  0xc0   :  { %v206_v26 = vsub.f32 1.0, %v205_v25 }
  0xc2   :  { %v207_v27 = vmul.f32 %v853_v24, %v206_v26 }
  0xc4   :  { %v208_v28 = vadd.f32 %v853_v24, %v207_v27 }
  0xc6   :  { %v212_v31 = vsel %vm211_vm4, %v853_v24, %v208_v28 }
  0xc7   :  { %v217_v34 = vsel %vm214_vm5, %v216_v32, %v212_v31 }
  0xc8   :  { %v220_v37 = vmul.f32 %v217_v34, %v167_v36 }
 0x125   :  { %v223_v33 = vpop.permute.xlu0 %222 }
 0x126   :  { %v225_v35 = vmul.f32 %v223_v33, %v217_v34 }
 0x128   :  { %227 = vrot.lane.b32.xlu0 %v225_v35, %s1099_s27 }
 0x19a   :  { %v228_v38 = vpop.permute.xlu0 %227 }
 0x19b   :  { %v230_v39 = vadd.f32 %v228_v38, %v220_v37 }
 0x19d   :  { %854 = vtanh.f32 %v230_v39  ;;  %238 = vst.msk [vmem:[#allocation11] sm:$0x3] %vm237_vm6, %v230_v39 }
 0x1a3   :  { %v855_v40 = vpop.eup %854 }
 0x1a4   :  { %233 = vrot.lane.b32.xlu1 %v855_v40, %s1099_s27 }
 0x216   :  { %v234_v41 = vpop.permute.xlu1 %233 }
 0x217   :  { %v1173_v42 = vmul.f32 %v234_v41, %v217_v34 }
 0x219   :  { %v244_v43 = vpack.c.bf16 %v1173_v42, %v1173_v42 }
 0x21b   :  { %246 = vrot.lane.b32.xlu1 %v244_v43, %s1100_s5 }
 0x28d   :  { %v247_v44 = vpop.permute.xlu1 %246 }
 0x28e   :  { %816 = vmatmul.msk.bf16.vlgmr.msra.gmra.mxu2 %vm182_vm0, %v247_v44 }
 0x311   :  { %v260_v45 = vpop.f32.mrf.mxu2 }
 0x312   :  { %v265_v46 = vrot.slane %v260_v45, 6 }
 0x314   :  { %v267_v47 = vadd.f32 %v265_v46, %v1166_v18 }
 0x316   :  { %856 = vtanh.f32 %v267_v47  ;;  %v817_v50 = vmul.f32 -1.442695, %v267_v47 }
 0x318   :  { %858 = vpow2.f32 %v817_v50 }
 0x319   :  { %v262_v48 = vpop.f32.mrf.mxu2 }
 0x31a   :  { %v160_v48 = vpop.f32.mrf.mxu0 }
 0x31c   :  { %v857_v49 = vpop.eup %856 }
 0x31d   :  { %293 = vrot.lane.b32.xlu2 %v857_v49, %s1099_s27 }
 0x31e   :  { %v859_v51 = vpop.eup %858 }
 0x31f   :  { %v271_v52 = vadd.f32 1.0, %v859_v51 }
 0x321   :  { %860 = vrcp.f32 %v271_v52  ;;  %v283_v58 = vand.u32 2147483648, %v271_v52  ;;  %vm277_vm8 = vweird.f32 %v271_v52  ;;  %v281_v59 = vand.u32 2147483647, %v271_v52 }
 0x323   :  { %v284_v61 = vor.u32 1.1754944e-38, %v283_v58  ;;  %vm282_vm10 = vcmp.eq.f32.partialorder %v281_v59, 8.507059e+37 }
 0x327   :  { %v861_v53 = vpop.eup %860 }
 0x328   :  { %v273_v54 = vmul.f32 %v861_v53, %v271_v52  ;;  %vm278_vm7 = vweird.f32 %v861_v53 }
 0x329   :  { %vm279_vm9 = vmor %vm277_vm8, %vm278_vm7 }
 0x32a   :  { %v274_v55 = vsub.f32 1.0, %v273_v54 }
 0x32c   :  { %v275_v56 = vmul.f32 %v861_v53, %v274_v55 }
 0x32e   :  { %v276_v57 = vadd.f32 %v861_v53, %v275_v56 }
 0x330   :  { %v280_v60 = vsel %vm279_vm9, %v861_v53, %v276_v57 }
 0x331   :  { %v285_v63 = vsel %vm282_vm10, %v284_v61, %v280_v60 }
 0x332   :  { %v289_v2 = vrot.slane %v285_v63, 2 }
 0x334   :  { %v291_v3 = vmul.f32 %v289_v2, %v230_v39 }
 0x377   :  { %v294_v62 = vpop.permute.xlu2 %293 }
 0x378   :  { %v296_v0 = vmul.f32 %v294_v62, %v285_v63 }
 0x37a   :  { %v298_v1 = vrot.slane %v296_v0, 2 }
 0x37c   :  { %299 = vrot.lane.b32.xlu2 %v298_v1, %s1099_s27 }
 0x3d6   :  { %v300_v4 = vpop.permute.xlu2 %299 }
 0x3d7   :  { %v302_v5 = vadd.f32 %v300_v4, %v291_v3 }
 0x3d9   :  { %862 = vtanh.f32 %v302_v5  ;;  %311 = vst.msk [vmem:[#allocation11 + $0x2] sm:$0x3] %vm237_vm6, %v302_v5 }
 0x3df   :  { %v863_v6 = vpop.eup %862 }
 0x3e0   :  { %v305_v7 = vrot.slane %v863_v6, 6 }
 0x3e2   :  { %306 = vrot.lane.b32.xlu0 %v305_v7, %s1099_s27 }
 0x454   :  { %v307_v8 = vpop.permute.xlu0 %306 }
 0x455   :  { %v1184_v9 = vmul.f32 %v307_v8, %v285_v63 }
 0x457   :  { %v319_v10 = vpack.c.bf16 %v1184_v9, %v1184_v9 }
 0x459   :  { %v321_v11 = vrot.slane %v319_v10, 1 }
 0x45b   :  { %322 = vrot.lane.b32.xlu1 %v321_v11, %s1100_s5 }
 0x4cd   :  { %v323_v12 = vpop.permute.xlu1 %322 }
 0x4ce   :  { %818 = vmatmul.msk.bf16.vlgmr.msra.gmra.mxu3 %vm182_vm0, %v323_v12 }
 0x551   :  { %v336_v13 = vpop.f32.mrf.mxu3 }
 0x552   :  { %v341_v14 = vrot.slane %v336_v13, 4 }
 0x554   :  { %v343_v16 = vadd.f32 %v341_v14, %v1166_v18 }
 0x556   :  { %864 = vtanh.f32 %v343_v16  ;;  %v819_v20 = vmul.f32 -1.442695, %v343_v16 }
 0x558   :  { %866 = vpow2.f32 %v819_v20 }
 0x559   :  { %v338_v17 = vpop.f32.mrf.mxu3 }
 0x55c   :  { %v865_v19 = vpop.eup %864 }
 0x55d   :  { %369 = vrot.lane.b32.xlu2 %v865_v19, %s1099_s27  ;;  %v1213_v19 = vadd.f32 %v1163_v15, %v160_v48 }
 0x55e   :  { %v867_v21 = vpop.eup %866 }
 0x55f   :  { %v347_v22 = vadd.f32 1.0, %v867_v21 }
 0x561   :  { %868 = vrcp.f32 %v347_v22  ;;  %v359_v28 = vand.u32 2147483648, %v347_v22  ;;  %vm353_vm12 = vweird.f32 %v347_v22  ;;  %v357_v29 = vand.u32 2147483647, %v347_v22 }
 0x563   :  { %v360_v31 = vor.u32 1.1754944e-38, %v359_v28  ;;  %vm358_vm14 = vcmp.eq.f32.partialorder %v357_v29, 8.507059e+37 }
 0x567   :  { %v869_v23 = vpop.eup %868 }
 0x568   :  { %v349_v24 = vmul.f32 %v869_v23, %v347_v22  ;;  %vm354_vm11 = vweird.f32 %v869_v23 }
 0x569   :  { %vm355_vm13 = vmor %vm353_vm12, %vm354_vm11 }
 0x56a   :  { %v350_v25 = vsub.f32 1.0, %v349_v24 }
 0x56c   :  { %v351_v26 = vmul.f32 %v869_v23, %v350_v25 }
 0x56e   :  { %v352_v27 = vadd.f32 %v869_v23, %v351_v26 }
 0x570   :  { %v356_v30 = vsel %vm355_vm13, %v869_v23, %v352_v27 }
 0x571   :  { %v361_v33 = vsel %vm358_vm14, %v360_v31, %v356_v30 }
 0x572   :  { %v365_v36 = vrot.slane %v361_v33, 4 }
 0x574   :  { %v367_v37 = vmul.f32 %v365_v36, %v302_v5 }
 0x5b7   :  { %v370_v32 = vpop.permute.xlu2 %369 }
 0x5b8   :  { %v372_v34 = vmul.f32 %v370_v32, %v361_v33 }
 0x5ba   :  { %v374_v35 = vrot.slane %v372_v34, 4 }
 0x5bc   :  { %375 = vrot.lane.b32.xlu0 %v374_v35, %s1099_s27 }
 0x62e   :  { %v376_v38 = vpop.permute.xlu0 %375 }
 0x62f   :  { %v378_v39 = vadd.f32 %v376_v38, %v367_v37 }
 0x631   :  { %870 = vtanh.f32 %v378_v39  ;;  %387 = vst.msk [vmem:[#allocation11 + $0x4] sm:$0x3] %vm237_vm6, %v378_v39 }
 0x637   :  { %v871_v40 = vpop.eup %870 }
 0x638   :  { %v381_v41 = vrot.slane %v871_v40, 4 }
 0x63a   :  { %382 = vrot.lane.b32.xlu1 %v381_v41, %s1099_s27 }
 0x6ac   :  { %v383_v43 = vpop.permute.xlu1 %382 }
 0x6ad   :  { %v1195_v44 = vmul.f32 %v383_v43, %v361_v33 }
 0x6af   :  { %v395_v45 = vpack.c.bf16 %v1195_v44, %v1195_v44 }
 0x6b1   :  { %v397_v46 = vrot.slane %v395_v45, 2 }
 0x6b3   :  { %398 = vrot.lane.b32.xlu2 %v397_v46, %s1100_s5 }
 0x70d   :  { %v399_v47 = vpop.permute.xlu2 %398 }
 0x70e   :  { %820 = vmatmul.msk.bf16.vlgmr.msrb.gmra.mxu0 %vm182_vm0, %v399_v47 }
 0x78b   :  { %v412_v49 = vpop.f32.mrf.mxu0 }
 0x78c   :  { %v417_v50 = vrot.slane %v412_v49, 2 }
 0x78e   :  { %v419_v51 = vadd.f32 %v417_v50, %v1166_v18 }
 0x790   :  { %872 = vtanh.f32 %v419_v51  ;;  %v821_v54 = vmul.f32 -1.442695, %v419_v51 }
 0x792   :  { %874 = vpow2.f32 %v821_v54 }
 0x793   :  { %v414_v52 = vpop.f32.mrf.mxu0 }
 0x796   :  { %v873_v53 = vpop.eup %872 }
 0x797   :  { %445 = vrot.lane.b32.xlu0 %v873_v53, %s1099_s27 }
 0x798   :  { %v875_v55 = vpop.eup %874 }
 0x799   :  { %v423_v56 = vadd.f32 1.0, %v875_v55 }
 0x79b   :  { %876 = vrcp.f32 %v423_v56  ;;  %v435_v62 = vand.u32 2147483648, %v423_v56  ;;  %vm429_vm1 = vweird.f32 %v423_v56  ;;  %v433_v63 = vand.u32 2147483647, %v423_v56 }
 0x79d   :  { %v436_v0 = vor.u32 1.1754944e-38, %v435_v62  ;;  %vm434_vm3 = vcmp.eq.f32.partialorder %v433_v63, 8.507059e+37 }
 0x7a1   :  { %v877_v57 = vpop.eup %876 }
 0x7a2   :  { %v425_v58 = vmul.f32 %v877_v57, %v423_v56  ;;  %vm430_vm15 = vweird.f32 %v877_v57 }
 0x7a3   :  { %vm431_vm2 = vmor %vm429_vm1, %vm430_vm15 }
 0x7a4   :  { %v426_v59 = vsub.f32 1.0, %v425_v58 }
 0x7a6   :  { %v427_v60 = vmul.f32 %v877_v57, %v426_v59 }
 0x7a8   :  { %v428_v61 = vadd.f32 %v877_v57, %v427_v60 }
 0x7aa   :  { %v432_v18 = vsel %vm431_vm2, %v877_v57, %v428_v61 }
 0x7ab   :  { %v437_v2 = vsel %vm434_vm3, %v436_v0, %v432_v18 }
 0x7ac   :  { %v441_v5 = vrot.slane %v437_v2, 6 }
 0x7ae   :  { %v443_v6 = vmul.f32 %v441_v5, %v378_v39 }
 0x809   :  { %v446_v1 = vpop.permute.xlu0 %445 }
 0x80a   :  { %v448_v3 = vmul.f32 %v446_v1, %v437_v2 }
 0x80c   :  { %v450_v4 = vrot.slane %v448_v3, 6 }
 0x80e   :  { %451 = vrot.lane.b32.xlu1 %v450_v4, %s1099_s27 }
 0x880   :  { %v452_v7 = vpop.permute.xlu1 %451 }
 0x881   :  { %v454_v8 = vadd.f32 %v452_v7, %v443_v6 }
 0x883   :  { %878 = vtanh.f32 %v454_v8  ;;  %463 = vst.msk [vmem:[#allocation11 + $0x6] sm:$0x3] %vm237_vm6, %v454_v8 }
 0x889   :  { %v879_v10 = vpop.eup %878 }
 0x88a   :  { %v457_v11 = vrot.slane %v879_v10, 2 }
 0x88c   :  { %458 = vrot.lane.b32.xlu2 %v457_v11, %s1099_s27 }
 0x8e6   :  { %v459_v12 = vpop.permute.xlu2 %458 }
 0x8e7   :  { %v1206_v13 = vmul.f32 %v459_v12, %v437_v2 }
 0x8e9   :  { %v471_v14 = vpack.c.bf16 %v1206_v13, %v1206_v13 }
 0x8eb   :  { %v473_v16 = vrot.slane %v471_v14, 3 }
 0x8ed   :  { %474 = vrot.lane.b32.xlu0 %v473_v16, %s1100_s5 }
 0x95f   :  { %v475_v17 = vpop.permute.xlu0 %474 }
 0x960   :  { %822 = vmatmul.msk.bf16.vlgmr.msrb.gmra.mxu1 %vm182_vm0, %v475_v17 }
 0x9dd   :  { %v488_v20 = vpop.f32.mrf.mxu1 }
 0x9de   :  { %v492_v21 = vadd.f32 %v488_v20, %v1213_v19 }
 0x9e0   :  { %880 = vtanh.f32 %v492_v21  ;;  %v823_v24 = vmul.f32 -1.442695, %v492_v21 }
 0x9e2   :  { %882 = vpow2.f32 %v823_v24 }
 0x9e5   :  { %v490_v22 = vpop.f32.mrf.mxu1 }
 0x9e6   :  { %v881_v23 = vpop.eup %880 }
 0x9e7   :  { %515 = vrot.lane.b32.xlu1 %v881_v23, %s1099_s27 }
 0x9e8   :  { %v883_v25 = vpop.eup %882 }
 0x9e9   :  { %v496_v26 = vadd.f32 1.0, %v883_v25 }
 0x9eb   :  { %884 = vrcp.f32 %v496_v26  ;;  %v508_v15 = vand.u32 2147483648, %v496_v26  ;;  %vm502_vm5 = vweird.f32 %v496_v26  ;;  %v506_v32 = vand.u32 2147483647, %v496_v26 }
 0x9ed   :  { %v509_v34 = vor.u32 1.1754944e-38, %v508_v15  ;;  %vm507_vm8 = vcmp.eq.f32.partialorder %v506_v32, 8.507059e+37 }
 0x9f1   :  { %v885_v27 = vpop.eup %884 }
 0x9f2   :  { %v498_v28 = vmul.f32 %v885_v27, %v496_v26  ;;  %vm503_vm4 = vweird.f32 %v885_v27 }
 0x9f3   :  { %vm504_vm7 = vmor %vm502_vm5, %vm503_vm4  ;;  %vm469_vm5 = vcmask 261126  }
 0x9f4   :  { %v499_v29 = vsub.f32 1.0, %v498_v28 }
 0x9f6   :  { %v500_v30 = vmul.f32 %v885_v27, %v499_v29 }
 0x9f8   :  { %v501_v31 = vadd.f32 %v885_v27, %v500_v30 }
 0x9fa   :  { %v505_v33 = vsel %vm504_vm7, %v885_v27, %v501_v31  ;;  %vm393_vm7 = vcmask 259076  }
 0x9fb   :  { %v510_v36 = vsel %vm507_vm8, %v509_v34, %v505_v33  ;;  %vm317_vm8 = vcmask 257026  }
 0x9fc   :  { %v513_v38 = vmul.f32 %v510_v36, %v454_v8 }
 0xa59   :  { %v516_v35 = vpop.permute.xlu1 %515 }
 0xa5a   :  { %v518_v37 = vmul.f32 %v516_v35, %v510_v36 }
 0xa5c   :  { %520 = vrot.lane.b32.xlu2 %v518_v37, %s1099_s27 }
 0xab6   :  { %v521_v39 = vpop.permute.xlu2 %520 }
 0xab7   :  { %v523_v40 = vadd.f32 %v521_v39, %v513_v38 }
 0xab9   :  { %886 = vtanh.f32 %v523_v40  ;;  %531 = vst.msk [vmem:[#allocation11 + $0x8] sm:$0x3] %vm237_vm6, %v523_v40 }
 0xabf   :  { %v887_v41 = vpop.eup %886 }
 0xac0   :  { %526 = vrot.lane.b32.xlu0 %v887_v41, %s1099_s27 }
 0xb32   :  { %v527_v43 = vpop.permute.xlu0 %526 }
 0xb33   :  { %v1220_v45 = vmul.f32 %v527_v43, %v510_v36 }
 0xb35   :  { %v538_v46 = vpack.c.bf16 %v1220_v45, %v1220_v45 }
 0xb37   :  { %540 = vrot.lane.b32.xlu1 %v538_v46, %s1100_s5 }
 0xba9   :  { %v541_v47 = vpop.permute.xlu1 %540 }
 0xbaa   :  { %824 = vmatmul.msk.bf16.vlgmr.msrb.gmra.mxu2 %vm182_vm0, %v541_v47 }
 0xc2d   :  { %v554_v48 = vpop.f32.mrf.mxu2 }
 0xc2e   :  { %v559_v49 = vrot.slane %v554_v48, 6 }
 0xc30   :  { %v561_v50 = vadd.f32 %v559_v49, %v1213_v19 }
 0xc32   :  { %888 = vtanh.f32 %v561_v50  ;;  %v825_v53 = vmul.f32 -1.442695, %v561_v50 }
 0xc34   :  { %890 = vpow2.f32 %v825_v53 }
 0xc35   :  { %v556_v51 = vpop.f32.mrf.mxu2 }
 0xc38   :  { %v889_v52 = vpop.eup %888 }
 0xc39   :  { %587 = vrot.lane.b32.xlu2 %v889_v52, %s1099_s27 }
 0xc3a   :  { %v891_v54 = vpop.eup %890 }
 0xc3b   :  { %v565_v55 = vadd.f32 1.0, %v891_v54 }
 0xc3d   :  { %892 = vrcp.f32 %v565_v55  ;;  %v577_v61 = vand.u32 2147483648, %v565_v55  ;;  %vm571_vm10 = vweird.f32 %v565_v55  ;;  %v575_v62 = vand.u32 2147483647, %v565_v55 }
 0xc3f   :  { %v578_v18 = vor.u32 1.1754944e-38, %v577_v61  ;;  %vm576_vm12 = vcmp.eq.f32.partialorder %v575_v62, 8.507059e+37 }
 0xc43   :  { %v893_v56 = vpop.eup %892 }
 0xc44   :  { %v567_v57 = vmul.f32 %v893_v56, %v565_v55  ;;  %vm572_vm9 = vweird.f32 %v893_v56 }
 0xc45   :  { %vm573_vm11 = vmor %vm571_vm10, %vm572_vm9 }
 0xc46   :  { %v568_v58 = vsub.f32 1.0, %v567_v57 }
 0xc48   :  { %v569_v59 = vmul.f32 %v893_v56, %v568_v58 }
 0xc4a   :  { %v570_v60 = vadd.f32 %v893_v56, %v569_v59 }
 0xc4c   :  { %v574_v63 = vsel %vm573_vm11, %v893_v56, %v570_v60 }
 0xc4d   :  { %v579_v1 = vsel %vm576_vm12, %v578_v18, %v574_v63 }
 0xc4e   :  { %v583_v4 = vrot.slane %v579_v1, 2 }
 0xc50   :  { %v585_v5 = vmul.f32 %v583_v4, %v523_v40 }
 0xc93   :  { %v588_v0 = vpop.permute.xlu2 %587 }
 0xc94   :  { %v590_v2 = vmul.f32 %v588_v0, %v579_v1 }
 0xc96   :  { %v592_v3 = vrot.slane %v590_v2, 2 }
 0xc98   :  { %593 = vrot.lane.b32.xlu0 %v592_v3, %s1099_s27 }
 0xd0a   :  { %v594_v6 = vpop.permute.xlu0 %593 }
 0xd0b   :  { %v596_v7 = vadd.f32 %v594_v6, %v585_v5 }
 0xd0d   :  { %894 = vtanh.f32 %v596_v7  ;;  %605 = vst.msk [vmem:[#allocation11 + $0xa] sm:$0x3] %vm237_vm6, %v596_v7 }
 0xd13   :  { %v895_v8 = vpop.eup %894 }
 0xd14   :  { %v599_v10 = vrot.slane %v895_v8, 6 }
 0xd16   :  { %600 = vrot.lane.b32.xlu1 %v599_v10, %s1099_s27 }
 0xd88   :  { %v601_v11 = vpop.permute.xlu1 %600 }
 0xd89   :  { %v1231_v12 = vmul.f32 %v601_v11, %v579_v1 }
 0xd8b   :  { %v612_v14 = vpack.c.bf16 %v1231_v12, %v1231_v12 }
 0xd8d   :  { %v614_v16 = vrot.slane %v612_v14, 1 }
 0xd8f   :  { %615 = vrot.lane.b32.xlu2 %v614_v16, %s1100_s5 }
 0xde9   :  { %v616_v17 = vpop.permute.xlu2 %615 }
 0xdea   :  { %826 = vmatmul.msk.bf16.vlgmr.msrb.gmra.mxu3 %vm182_vm0, %v616_v17 }
 0xe6d   :  { %v629_v20 = vpop.f32.mrf.mxu3 }
 0xe6e   :  { %v634_v21 = vrot.slane %v629_v20, 4 }
 0xe70   :  { %v636_v22 = vadd.f32 %v634_v21, %v1213_v19 }
 0xe72   :  { %896 = vtanh.f32 %v636_v22  ;;  %v827_v25 = vmul.f32 -1.442695, %v636_v22 }
 0xe74   :  { %898 = vpow2.f32 %v827_v25 }
 0xe75   :  { %v631_v23 = vpop.f32.mrf.mxu3 }
 0xe78   :  { %v897_v24 = vpop.eup %896 }
 0xe79   :  { %662 = vrot.lane.b32.xlu0 %v897_v24, %s1099_s27 }
 0xe7a   :  { %v899_v26 = vpop.eup %898 }
 0xe7b   :  { %v640_v27 = vadd.f32 1.0, %v899_v26 }
 0xe7d   :  { %900 = vrcp.f32 %v640_v27  ;;  %v652_v32 = vand.u32 2147483648, %v640_v27  ;;  %vm646_vm14 = vweird.f32 %v640_v27  ;;  %v650_v33 = vand.u32 2147483647, %v640_v27 }
 0xe7f   :  { %v653_v35 = vor.u32 1.1754944e-38, %v652_v32  ;;  %vm651_vm1 = vcmp.eq.f32.partialorder %v650_v33, 8.507059e+37 }
 0xe83   :  { %v901_v28 = vpop.eup %900 }
 0xe84   :  { %v642_v29 = vmul.f32 %v901_v28, %v640_v27  ;;  %vm647_vm13 = vweird.f32 %v901_v28 }
 0xe85   :  { %vm648_vm15 = vmor %vm646_vm14, %vm647_vm13 }
 0xe86   :  { %v643_v30 = vsub.f32 1.0, %v642_v29 }
 0xe88   :  { %v644_v31 = vmul.f32 %v901_v28, %v643_v30 }
 0xe8a   :  { %v645_v15 = vadd.f32 %v901_v28, %v644_v31 }
 0xe8c   :  { %v649_v34 = vsel %vm648_vm15, %v901_v28, %v645_v15 }
 0xe8d   :  { %v654_v37 = vsel %vm651_vm1, %v653_v35, %v649_v34 }
 0xe8e   :  { %v658_v40 = vrot.slane %v654_v37, 4 }
 0xe90   :  { %v660_v41 = vmul.f32 %v658_v40, %v596_v7 }
 0xeeb   :  { %v663_v36 = vpop.permute.xlu0 %662 }
 0xeec   :  { %v665_v38 = vmul.f32 %v663_v36, %v654_v37 }
 0xeee   :  { %v667_v39 = vrot.slane %v665_v38, 4 }
 0xef0   :  { %668 = vrot.lane.b32.xlu1 %v667_v39, %s1099_s27 }
 0xf62   :  { %v669_v43 = vpop.permute.xlu1 %668 }
 0xf63   :  { %v671_v46 = vadd.f32 %v669_v43, %v660_v41 }
 0xf65   :  { %902 = vtanh.f32 %v671_v46  ;;  %680 = vst.msk [vmem:[#allocation11 + $0xc] sm:$0x3] %vm237_vm6, %v671_v46 }
 0xf6b   :  { %v903_v47 = vpop.eup %902 }
 0xf6c   :  { %v674_v48 = vrot.slane %v903_v47, 4 }
 0xf6e   :  { %675 = vrot.lane.b32.xlu2 %v674_v48, %s1099_s27 }
 0xfc8   :  { %v676_v49 = vpop.permute.xlu2 %675 }
 0xfc9   :  { %v678_v50 = vmul.f32 %v676_v49, %v654_v37 }
 0xfcb   :  { %v687_v51 = vpack.c.bf16 %v678_v50, %v678_v50 }
 0xfcd   :  { %v689_v52 = vrot.slane %v687_v51, 2 }
 0xfcf   :  { %690 = vrot.lane.b32.xlu0 %v689_v52, %s1100_s5 }
0x1041   :  { %v691_v53 = vpop.permute.xlu0 %690 }
0x1042   :  { %828 = vmatmul.msk.bf16.vlgmr.msra.gmra.mxu0 %vm182_vm0, %v691_v53 }
0x10bf   :  { %v704_v54 = vpop.f32.mrf.mxu0 }
0x10c0   :  { %v709_v55 = vrot.slane %v704_v54, 2 }
0x10c2   :  { %v711_v56 = vadd.f32 %v709_v55, %v1213_v19 }
0x10c4   :  { %904 = vtanh.f32 %v711_v56  ;;  %v829_v59 = vmul.f32 -1.442695, %v711_v56 }
0x10c6   :  { %906 = vpow2.f32 %v829_v59 }
0x10c7   :  { %v706_v57 = vpop.f32.mrf.mxu0 }
0x10ca   :  { %v905_v58 = vpop.eup %904 }
0x10cb   :  { %737 = vrot.lane.b32.xlu1 %v905_v58, %s1099_s27 }
0x10cc   :  { %v907_v60 = vpop.eup %906 }
0x10cd   :  { %v715_v61 = vadd.f32 1.0, %v907_v60 }
0x10cf   :  { %908 = vrcp.f32 %v715_v61  ;;  %v727_v1 = vand.u32 2147483648, %v715_v61  ;;  %vm721_vm2 = vweird.f32 %v715_v61  ;;  %v725_v2 = vand.u32 2147483647, %v715_v61 }
0x10d1   :  { %v728_v3 = vor.u32 1.1754944e-38, %v727_v1  ;;  %vm726_vm4 = vcmp.eq.f32.partialorder %v725_v2, 8.507059e+37 }
0x10d3   :  { %240 = vrot.lane.b32.xlu1 %v1173_v42, %s1100_s5 }
0x10d5   :  { %v909_v62 = vpop.eup %908 }
0x10d6   :  { %v717_v19 = vmul.f32 %v909_v62, %v715_v61  ;;  %vm722_vm0 = vweird.f32 %v909_v62 }
0x10d7   :  { %vm723_vm3 = vmor %vm721_vm2, %vm722_vm0 }
0x10d8   :  { %v718_v63 = vsub.f32 1.0, %v717_v19 }
0x10da   :  { %v719_v18 = vmul.f32 %v909_v62, %v718_v63 }
0x10db   :  { %465 = vrot.lane.b32.xlu1 %v1206_v13, %s1100_s5 }
0x10dc   :  { %v720_v0 = vadd.f32 %v909_v62, %v719_v18 }
0x10de   :  { %v724_v42 = vsel %vm723_vm3, %v909_v62, %v720_v0 }
0x10df   :  { %v729_v4 = vsel %vm726_vm4, %v728_v3, %v724_v42 }
0x10e0   :  { %v733_v11 = vrot.slane %v729_v4, 6 }
0x10e2   :  { %v735_v14 = vmul.f32 %v733_v11, %v671_v46 }
0x10e3   :  { %682 = vrot.lane.b32.xlu1 %v678_v50, %s1100_s5 }
0x113d   :  { %v738_v13 = vpop.permute.xlu1 %737 }
0x113e   :  { %v740_v5 = vmul.f32 %v738_v13, %v729_v4 }
0x1140   :  { %v742_v6 = vrot.slane %v740_v5, 6 }
0x1142   :  { %743 = vrot.lane.b32.xlu2 %v742_v6, %s1099_s27 }
0x1145   :  { %v241_v7 = vpop.permute.xlu1 %240 }
0x1146   :  { %243 = vst.msk [vmem:[#allocation12] sm:$0x3] %vm237_vm6, %v241_v7 }
0x114a   :  { %313 = vrot.lane.b32.xlu2 %v1184_v9, %s1100_s5 }
0x114d   :  { %v466_v8 = vpop.permute.xlu1 %465 }
0x114e   :  { %470 = vst.msk [vmem:[#allocation12] sm:$0xc0] %vm469_vm5, %v466_v8 }
0x1152   :  { %533 = vrot.lane.b32.xlu2 %v1220_v45, %s1100_s5 }
0x1155   :  { %v683_v10 = vpop.permute.xlu1 %682 }
0x1156   :  { %686 = vst.msk [vmem:[#allocation12 + $0x8] sm:$0x30] %vm393_vm7, %v683_v10 }
0x119c   :  { %v744_v16 = vpop.permute.xlu2 %743 }
0x119d   :  { %v746_v17 = vadd.f32 %v744_v16, %v735_v14 }
0x119f   :  { %910 = vtanh.f32 %v746_v17  ;;  %755 = vst.msk [vmem:[#allocation11 + $0xe] sm:$0x3] %vm237_vm6, %v746_v17 }
0x11a0   :  { %774 = dma.vmem_to_hbm [thread:$0]  %s767_s29, 256, %s769_s9, [#allocation4], %s1100_s5, %s1100_s5, %s1102_s10  }
0x11a4   :  { %v314_v9 = vpop.permute.xlu2 %313 }
0x11a5   :  { %v911_v20 = vpop.eup %910  ;;  %318 = vst.msk [vmem:[#allocation12] sm:$0xc] %vm317_vm8, %v314_v9 }
0x11a6   :  { %v749_v21 = vrot.slane %v911_v20, 2 }
0x11a8   :  { %750 = vrot.lane.b32.xlu0 %v749_v21, %s1099_s27 }
0x11ac   :  { %v534_v45 = vpop.permute.xlu2 %533 }
0x11ad   :  { %537 = vst.msk [vmem:[#allocation12 + $0x8] sm:$0x3] %vm237_vm6, %v534_v45 }
0x11b0   :  { %389 = vrot.lane.b32.xlu0 %v1195_v44, %s1100_s5 }
0x11b8   :  { %607 = vrot.lane.b32.xlu0 %v1231_v12, %s1100_s5 }
0x121a   :  { %v751_v22 = vpop.permute.xlu0 %750 }
0x121b   :  { %v753_v23 = vmul.f32 %v751_v22, %v729_v4 }
0x121d   :  { %757 = vrot.lane.b32.xlu2 %v753_v23, %s1100_s5 }
0x1222   :  { %v390_v44 = vpop.permute.xlu0 %389 }
0x1223   :  { %394 = vst.msk [vmem:[#allocation12] sm:$0x30] %vm393_vm7, %v390_v44 }
0x122a   :  { %v608_v12 = vpop.permute.xlu0 %607 }
0x122b   :  { %611 = vst.msk [vmem:[#allocation12 + $0x8] sm:$0xc] %vm317_vm8, %v608_v12 }
0x1277   :  { %v758_v24 = vpop.permute.xlu2 %757 }
0x1278   :  { %761 = vst.msk [vmem:[#allocation12 + $0x8] sm:$0xc0] %vm469_vm5, %v758_v24 }
0x1279   :  { %787 = dma.vmem_to_hbm [thread:$0]  %s780_s12, 256, %s782_s14, [#allocation13], %s1100_s5, %s1100_s5, %s1102_s10  }
0x127a   :  { %1086 = dma.done.wait [#allocation4], 256  }
0x127b   :  { %1087 = vsyncadd [#allocation4], 4294967040 }
0x127c   :  { %1088 = dma.done.wait [#allocation13], 256  }
0x127d   :  { %1089 = vsyncadd [#allocation13], 4294967040 }
0x127e   :  { %796 = vsyncpa [#allocation3], 1 }
0x127f   :  { %797 = vsyncpa [#allocation6], 1 }
0x1280   :  { %798 = vsyncpa [#allocation9], 1 }
0x1281   :  { %799 = vsyncpa [#allocation4], 1 }
0x1282   :  { %800 = vsyncpa [#allocation13], 1 }

</bundles_post_ra>
